<compile_context>
chip_gen: v7x
topology: tpu7x:2x2x1
jax: 0.10.0
libtpu: 0.0.40
codegen_flags: <defaults>
</compile_context>

<pallas_src>
import functools

import jax
import jax.numpy as jnp
from jax.experimental import pallas as pl
from jax.experimental.pallas import tpu as pltpu


def _round_up(x, m):
    return (x + m - 1) // m * m


def _t5_bias_kernel(emb_t_ref, relmd_ref, out_ref, *, tile_q, num_buckets,
                    max_distance):
    """emb_t_ref : (H_pad, B_pad) f32 — zero-padded transposed embedding table.
    relmd_ref : (1, tile)    i32 — precomputed (k_pos - q_local + max_distance).
    out_ref   : (H_pad, tile) f32 — this q-tile's bias, flattened (q, k), k fastest.
    """
    i = pl.program_id(0)

    # Shift the precomputed local pattern to this q-tile and clamp to the band.
    t = relmd_ref[...] - i * tile_q
    t = jnp.clip(t, 0, 2 * max_distance - 1)
    if (num_buckets & (num_buckets - 1)) == 0:
        bucket = jnp.bitwise_and(t, num_buckets - 1)     # clipped value >= 0
    else:
        bucket = t % num_buckets                          # small (1, tile) array

    b_pad = emb_t_ref.shape[1]
    tile = out_ref.shape[1]

    # One-hot over (padded) buckets -> embedding lookup becomes an MXU matmul.
    # Padded bucket rows never match (bucket < num_buckets) and padded table
    # rows are zero, so the result is exact.
    b_iota = jax.lax.broadcasted_iota(jnp.int32, (b_pad, tile), 0)
    onehot = (bucket == b_iota).astype(jnp.float32)       # (B_pad, tile), 0/1

    # (H_pad, B_pad) @ (B_pad, tile) -> (H_pad, tile); exact for 0/1 one-hot.
    out_ref[...] = jnp.dot(emb_t_ref[...], onehot,
                           preferred_element_type=jnp.float32)


def t5_relative_position_bias(emb_weight, q_len, k_len, max_distance, tile_q=None):
    """emb_weight: (num_buckets, num_heads) f32 (== nn.Embedding.weight).
    Returns bias of shape (1, num_heads, q_len, k_len), float32."""
    num_buckets, num_heads = emb_weight.shape

    # Pad heads to the f32 sublane multiple (8), k to the lane multiple (128),
    # buckets to a sublane multiple (8); padding is exact-neutral and sliced off
    # (only when it exists) below.
    h_pad = _round_up(num_heads, 8)
    k_pad = _round_up(k_len, 128)
    b_pad = _round_up(num_buckets, 8)

    # ---- q-tile selection: big steps, balanced tiles, >=2 grid steps ---------
    if tile_q is None:
        target_lanes = 128 * 1024          # ~4 MiB f32 out block at H_pad=8
        tq_target = max(8, min(512, (target_lanes // k_pad) // 8 * 8))
    else:
        tq_target = max(8, _round_up(int(tile_q), 8))
    n_tiles = pl.cdiv(q_len, tq_target)
    if n_tiles == 1 and q_len >= 16:
        n_tiles = 2                        # keep both v7x TensorCores busy
    tile_q = _round_up(pl.cdiv(q_len, n_tiles), 8)   # balanced -> <=7 pad rows
    n_tiles = pl.cdiv(q_len, tile_q)                 # drop any all-padding tile
    q_pad = n_tiles * tile_q
    tile = tile_q * k_pad
    grid = (n_tiles,)

    # ---- tiny host-side precompute -------------------------------------------
    emb_t = jnp.pad(emb_weight.T.astype(jnp.float32),
                    ((0, h_pad - num_heads), (0, b_pad - num_buckets)))  # (H_pad,B_pad)
    f = jnp.arange(tile, dtype=jnp.int32)
    # (k_pos - q_local + max_distance) for one q-tile; kernel only subtracts i*tile_q.
    relmd = ((f % k_pad) - (f // k_pad) + max_distance).reshape(1, tile)

    # ---- VMEM budget: 2x out block (double buffer) + one-hot + temps ---------
    vmem_need = (2 * h_pad * tile * 4          # output double buffer
                 + b_pad * tile * 4            # one-hot intermediate
                 + 8 * tile * 4                # iota / bucket / relmd temps
                 + 2 * h_pad * b_pad * 4)
    vmem_limit = int(min(max(int(vmem_need * 1.6), 16 * 1024 * 1024),
                         56 * 1024 * 1024))    # never claim all of v7x's 64 MiB

    kernel = functools.partial(
        _t5_bias_kernel,
        tile_q=tile_q,
        num_buckets=num_buckets,
        max_distance=max_distance,
    )

    out_flat = pl.pallas_call(
        kernel,
        out_shape=jax.ShapeDtypeStruct((h_pad, q_pad * k_pad), jnp.float32),
        grid=grid,
        in_specs=[
            pl.BlockSpec((h_pad, b_pad), lambda i: (0, 0)),  # table, fetched once
            pl.BlockSpec((1, tile), lambda i: (0, 0)),        # rel pattern, fetched once
        ],
        out_specs=pl.BlockSpec((h_pad, tile), lambda i: (0, i)),
        compiler_params=pltpu.CompilerParams(
            dimension_semantics=("parallel",),
            vmem_limit_bytes=vmem_limit,
        ),
    )(emb_t, relmd)

    # (H_pad, Q_pad*K_pad) -> (H_pad, Q_pad, K_pad) is a free minor-dim split.
    out = out_flat.reshape(h_pad, q_pad, k_pad)
    # Only pay for the slice copy when padding actually exists.
    if (h_pad, q_pad, k_pad) != (num_heads, q_len, k_len):
        out = out[:num_heads, :q_len, :k_len]
    return out[None]                                           # (1, H, Q, K)


def _reference(emb_weight, q_len, k_len, max_distance):
    """Pure-JAX reference mirroring the PyTorch forward exactly."""
    num_buckets, _ = emb_weight.shape
    ctx = jnp.arange(q_len, dtype=jnp.int32)[:, None]
    mem = jnp.arange(k_len, dtype=jnp.int32)[None, :]
    rel = mem - ctx
    bucket = jnp.clip(rel + max_distance, 0, 2 * max_distance - 1) % num_buckets
    bias = emb_weight[bucket]                                  # (Q, K, H)
    return jnp.transpose(bias, (2, 0, 1))[None]                # (1, H, Q, K)


if __name__ == "__main__":
    key = jax.random.PRNGKey(0)
    k1, k2, k3 = jax.random.split(key, 3)

    # Config 1: module defaults-ish, power-of-two buckets, tiny seq (1-step grid).
    num_buckets, num_heads, max_distance = 8, 4, 16
    q_len, k_len = 8, 8
    emb_w1 = jax.random.normal(k1, (num_buckets, num_heads), dtype=jnp.float32)
    out1 = jax.block_until_ready(
        t5_relative_position_bias(emb_w1, q_len, k_len, max_distance))
    ref1 = _reference(emb_w1, q_len, k_len, max_distance)
    assert out1.shape == (1, num_heads, q_len, k_len), out1.shape
    assert out1.dtype == jnp.float32
    assert jnp.allclose(out1, ref1, atol=1e-5, rtol=1e-5), "mismatch (config 1)"

    # Config 2: head/bucket/k padding, non-pow2 buckets, explicit tile_q -> 3 steps.
    num_buckets2, num_heads2, max_distance2 = 6, 3, 10
    q_len2, k_len2 = 24, 20
    emb_w2 = jax.random.normal(k2, (num_buckets2, num_heads2), dtype=jnp.float32)
    out2 = jax.block_until_ready(
        t5_relative_position_bias(emb_w2, q_len2, k_len2, max_distance2, tile_q=8))
    ref2 = _reference(emb_w2, q_len2, k_len2, max_distance2)
    assert out2.shape == (1, num_heads2, q_len2, k_len2), out2.shape
    assert jnp.allclose(out2, ref2, atol=1e-5, rtol=1e-5), "mismatch (config 2)"

    # Config 3: aligned shapes (no epilogue slice), non-pow2 k_pad (384), >=2-step
    # balanced grid, larger bucket count.
    num_buckets3, num_heads3, max_distance3 = 32, 8, 128
    q_len3, k_len3 = 256, 384
    emb_w3 = jax.random.normal(k3, (num_buckets3, num_heads3), dtype=jnp.float32)
    out3 = jax.block_until_ready(
        t5_relative_position_bias(emb_w3, q_len3, k_len3, max_distance3))
    ref3 = _reference(emb_w3, q_len3, k_len3, max_distance3)
    assert out3.shape == (1, num_heads3, q_len3, k_len3), out3.shape
    assert jnp.allclose(out3, ref3, atol=1e-5, rtol=1e-5), "mismatch (config 3)"

    print("KERNEL_OK")
</pallas_src>

<mosaic_0001>
module attributes {stable_mosaic.version = 11 : i64} {
  func.func @_t5_bias_kernel(%arg0: i32, %arg1: memref<8x8xf32, #tpu.memory_space<vmem>>, %arg2: memref<1x1024xi32, #tpu.memory_space<vmem>>, %arg3: memref<8x1024xf32, #tpu.memory_space<vmem>>) attributes {dimension_semantics = [#tpu.dimension_semantics<parallel>], iteration_bounds = array<i64: 1>, scalar_prefetch = 0 : i64, scratch_operands = 0 : i64, tpu.core_type = #tpu.core_type<tc>, window_params = [{pipeline_mode = #tpu.pipeline_mode<synchronous>, transform_indices = @transform_0, window_bounds = array<i64: 8, 8>}, {pipeline_mode = #tpu.pipeline_mode<synchronous>, transform_indices = @transform_1, window_bounds = array<i64: 1, 1024>}, {transform_indices = @transform_2, window_bounds = array<i64: 8, 1024>}]} {
    %c0 = arith.constant 0 : index
    %c0_0 = arith.constant 0 : index
    %0 = vector.load %arg2[%c0, %c0_0] : memref<1x1024xi32, #tpu.memory_space<vmem>>, vector<1x1024xi32>
    %c8_i32 = arith.constant 8 : i32
    %1 = arith.muli %arg0, %c8_i32 : i32
    %2 = vector.broadcast %1 : i32 to vector<1x1024xi32>
    %3 = arith.subi %0, %2 : vector<1x1024xi32>
    %c0_i32 = arith.constant 0 : i32
    %c31_i32 = arith.constant 31 : i32
    %4 = vector.broadcast %c0_i32 : i32 to vector<1x1024xi32>
    %5 = arith.maxsi %4, %3 : vector<1x1024xi32>
    %6 = vector.broadcast %c31_i32 : i32 to vector<1x1024xi32>
    %7 = arith.minsi %6, %5 : vector<1x1024xi32>
    %c7_i32 = arith.constant 7 : i32
    %8 = vector.broadcast %c7_i32 : i32 to vector<1x1024xi32>
    %9 = arith.andi %7, %8 : vector<1x1024xi32>
    %10 = tpu.iota {dimensions = array<i32: 0>} : vector<8x1024xi32>
    %11 = vector.broadcast %9 : vector<1x1024xi32> to vector<8x1024xi32>
    %12 = arith.cmpi eq, %11, %10 : vector<8x1024xi32>
    %13 = arith.extui %12 : vector<8x1024xi1> to vector<8x1024xi32>
    %14 = arith.sitofp %13 : vector<8x1024xi32> to vector<8x1024xf32>
    %c0_1 = arith.constant 0 : index
    %c0_2 = arith.constant 0 : index
    %15 = vector.load %arg1[%c0_1, %c0_2] : memref<8x8xf32, #tpu.memory_space<vmem>>, vector<8x8xf32>
    %cst = arith.constant dense<0.000000e+00> : vector<8x1024xf32>
    %16 = tpu.matmul %15, %14, %cst {dimension_numbers = #tpu.dot_dimension_numbers<[1], [0], [0], [1], [0, 0, 1, 1], [], []>} : vector<8x8xf32>, vector<8x1024xf32>, vector<8x1024xf32> -> vector<8x1024xf32>
    %c0_3 = arith.constant 0 : index
    %c0_4 = arith.constant 0 : index
    %17 = vector.load %arg3[%c0_3, %c0_4] : memref<8x1024xf32, #tpu.memory_space<vmem>>, vector<8x1024xf32>
    tpu.vector_store %arg3[%c0_3, %c0_4], %16 {strides = array<i32>} : memref<8x1024xf32, #tpu.memory_space<vmem>>, vector<8x1024xf32>,
    return
  }
  func.func @transform_0(%arg0: i32) -> (i32, i32) {
    %c0_i32 = arith.constant 0 : i32
    %c0_i32_0 = arith.constant 0 : i32
    %c0_i32_1 = arith.constant 0 : i32
    return %c0_i32, %c0_i32_0 : i32, i32
  }
  func.func @transform_1(%arg0: i32) -> (i32, i32) {
    %c0_i32 = arith.constant 0 : i32
    %c0_i32_0 = arith.constant 0 : i32
    %c0_i32_1 = arith.constant 0 : i32
    return %c0_i32, %c0_i32_0 : i32, i32
  }
  func.func @transform_2(%arg0: i32) -> (i32, i32) {
    %c0_i32 = arith.constant 0 : i32
    %c0_i32_0 = arith.constant 0 : i32
    return %c0_i32, %arg0 : i32, i32
  }
}

</mosaic_0001>

<bundles_post_ra>
// kernel: tpu_custom_call.1
= control target key start
LH: loop header
LB: loop body
LE: loop exit
PB: predicated region body
PF: predicated region fallthrough
CT: control target
= control target key end

     0   :  { %7 = vsyncpa [#allocation3], 0  ;;  %s573_s0 = inlined_call_operand.hbm [shape: f32[8,8], index: 0, kind: input, shape index: {}]   ;;  %s574_s1 = inlined_call_operand.hbm [shape: s32[1,1024], index: 1, kind: input, shape index: {}]   ;;  %s575_s2 = inlined_call_operand.hbm [shape: f32[8,1024], index: 2, kind: output, shape index: {}]  }
   0x1   :  { %8 = vsyncpa [#allocation6], 0 }
   0x2   :  { %9 = vsyncpa [#allocation4], 0  ;;  %s513_s9 = smov [#allocation2]   ;;  %s514_s11 = smov [#allocation5]  }
   0x3   :  { %s16_s10 = sshll.u32 %s513_s9, 4  ;;  %s26_s12 = sshll.u32 %s514_s11, 4  ;;  %s17_s10 = int_to_ptr.vmem [resolvable:$true] %s16_s10  ;;  %s27_s12 = int_to_ptr.vmem [resolvable:$true] %s26_s12 }
   0x4   :  { %s441_s15 = scalar_lea.hbm %s573_s0, 128 }
   0x5   :  { %p442_p0 = scmp.ne.s32.totalorder %s573_s0, %s441_s15  ;;  %p445_p1 = scmp.lt.u32.totalorder %s441_s15, %s573_s0 }
   0x7   :  { %p447_p2 = pnand %p445_p1, %p442_p0 }
   0x9   :  { %450 = shalt.err (!%p447_p2)
}
   0xa   :  { %s451_s20 = scalar_lea.vmem %s17_s10, 128  ;;  %p456_p4 = scmp.lt.s32.totalorder %s17_s10, %s17_s10 }
   0xb   :  { %p452_p3 = scmp.ne.s32.totalorder %s17_s10, %s451_s20  ;;  %p457_p5 = scmp.lt.s32.totalorder %s451_s20, %s451_s20 }
   0xd   :  { %p458_p6 = por %p457_p5, %p456_p4 }
   0xf   :  { %p459_p7 = pnand %p458_p6, %p452_p3 }
  0x11   :  { %462 = shalt.err (!%p459_p7)
}
  0x12   :  { %19 = dma.hbm_to_vmem [thread:$0]  %s573_s0, 128, %s17_s10, [#allocation3]  }
  0x13   :  { %s463_s25 = scalar_lea.hbm %s574_s1, 128 }
  0x14   :  { %p464_p8 = scmp.ne.s32.totalorder %s574_s1, %s463_s25  ;;  %p467_p9 = scmp.lt.u32.totalorder %s463_s25, %s574_s1 }
  0x16   :  { %p469_p10 = pnand %p467_p9, %p464_p8 }
  0x18   :  { %472 = shalt.err (!%p469_p10)
}
  0x19   :  { %s473_s30 = scalar_lea.vmem %s27_s12, 128  ;;  %p478_p12 = scmp.lt.s32.totalorder %s27_s12, %s27_s12 }
  0x1a   :  { %p474_p11 = scmp.ne.s32.totalorder %s27_s12, %s473_s30  ;;  %p479_p13 = scmp.lt.s32.totalorder %s473_s30, %s473_s30 }
  0x1c   :  { %p480_p0 = por %p479_p13, %p478_p12 }
  0x1e   :  { %p481_p1 = pnand %p480_p0, %p474_p11 }
  0x20   :  { %484 = shalt.err (!%p481_p1)
}
  0x21   :  { %29 = dma.hbm_to_vmem [thread:$0]  %s574_s1, 128, %s27_s12, [#allocation6]  }
  0x22   :  { %507 = dma.done.wait [#allocation3], 128  }
  0x23   :  { %508 = vsyncadd [#allocation3], 4294967168 }
  0x24   :  { %509 = dma.done.wait [#allocation6], 128  }
  0x25   :  { %510 = vsyncadd [#allocation6], 4294967168  ;;  %v45_v0 = vlaneseq  ;;  %v515_v1 = vmov 0.0   ;;  %v36_v3 = vld [vmem:[#allocation5] sm:$0xff]  ;;  %vm104_vm2 = vcmask 64512   ;;  %v103_v23 = vld [vmem:[#allocation2] sm:$0xff] }
  0x26   :  { %172 = vmatprep.mubr.f32.mxu0 %v515_v1  ;;  %243 = vmatprep.mubr.f32.mxu1 %v515_v1  ;;  %vm40_vm0 = vcmp.gt.s32.totalorder %v36_v3, 0  ;;  %v516_v24 = vmov 1.0   ;;  %s517_s1 = smov [#allocation7]  }
  0x27   :  { %v46_v2 = vshrl.u32 %v45_v0, 7  ;;  %v41_v4 = vsel %vm40_vm0, %v36_v3, 0  ;;  %s406_s4 = sshll.u32 %s517_s1, 4  ;;  %s407_s4 = int_to_ptr.vmem [resolvable:$true] %s406_s4 }
  0x28   :  { %vm42_vm1 = vcmp.lt.s32.totalorder %v41_v4, 31  ;;  %s485_s5 = scalar_lea.vmem %s407_s4, 1024  ;;  %p490_p3 = scmp.lt.s32.totalorder %s407_s4, %s407_s4 }
  0x29   :  { %v53_v5 = vsub.s32 1, %v46_v2  ;;  %v61_v6 = vsub.s32 3, %v46_v2  ;;  %v49_v7 = vsub.s32 0, %v46_v2  ;;  %v57_v8 = vsub.s32 2, %v46_v2  ;;  %p486_p2 = scmp.ne.s32.totalorder %s407_s4, %s485_s5  ;;  %p491_p4 = scmp.lt.s32.totalorder %s485_s5, %s485_s5 }
  0x2a   :  { %v69_v9 = vsub.s32 5, %v46_v2  ;;  %v43_v10 = vsel %vm42_vm1, %v41_v4, 31  ;;  %v77_v11 = vsub.s32 7, %v46_v2  ;;  %v65_v12 = vsub.s32 4, %v46_v2 }
  0x2b   :  { %v73_v13 = vsub.s32 6, %v46_v2  ;;  %v44_v14 = vand.u32 7, %v43_v10  ;;  %p492_p5 = por %p491_p4, %p490_p3 }
  0x2d   :  { %v54_v15 = vrot.slane %v44_v14, %v53_v5  ;;  %v62_v16 = vrot.slane %v44_v14, %v61_v6  ;;  %v50_v17 = vrot.slane %v44_v14, %v49_v7  ;;  %v58_v18 = vrot.slane %v44_v14, %v57_v8  ;;  %p493_p6 = pnand %p492_p5, %p486_p2 }
  0x2e   :  { %v70_v19 = vrot.slane %v44_v14, %v69_v9  ;;  %v78_v20 = vrot.slane %v44_v14, %v77_v11  ;;  %v66_v21 = vrot.slane %v44_v14, %v65_v12  ;;  %v74_v22 = vrot.slane %v44_v14, %v73_v13 }
  0x2f   :  { %vm80_vm3 = vcmp.eq.s32.totalorder %v54_v15, %v46_v2  ;;  %vm82_vm4 = vcmp.eq.s32.totalorder %v62_v16, %v46_v2  ;;  %vm79_vm5 = vcmp.eq.s32.totalorder %v50_v17, %v46_v2  ;;  %vm81_vm6 = vcmp.eq.s32.totalorder %v58_v18, %v46_v2 }
  0x30   :  { %424 = vmatprep.subr.msk.mxu0 %vm80_vm3, %v516_v24  ;;  %427 = vmatprep.subr.msk.mxu1 %vm82_vm4, %v516_v24  ;;  %vm84_vm7 = vcmp.eq.s32.totalorder %v70_v19, %v46_v2  ;;  %vm86_vm8 = vcmp.eq.s32.totalorder %v78_v20, %v46_v2  ;;  %vm83_vm9 = vcmp.eq.s32.totalorder %v66_v21, %v46_v2 }
  0x31   :  { %425 = vmatpush1.msk.msra.mxu0 %vm79_vm5, %v516_v24  ;;  %428 = vmatpush1.msk.msra.mxu1 %vm81_vm6, %v516_v24  ;;  %vm85_vm10 = vcmp.eq.s32.totalorder %v74_v22, %v46_v2 }
  0x32   :  { %426 = vmatmul.mubr.msk.f32.vlgmr.msra.gmra.mrb[0].mxu0 %vm104_vm2, %v103_v23  ;;  %429 = vmatmul.mubr.msk.f32.vlgmr.msra.gmra.mrb[0].mxu1 %vm104_vm2, %v103_v23 }
  0x33   :  { %430 = vmatprep.subr.msk.mxu0 %vm84_vm7, %v516_v24  ;;  %433 = vmatprep.subr.msk.mxu1 %vm86_vm8, %v516_v24 }
  0x34   :  { %431 = vmatpush1.msk.msra.mxu0 %vm83_vm9, %v516_v24  ;;  %434 = vmatpush1.msk.msra.mxu1 %vm85_vm10, %v516_v24 }
  0x35   :  { %314 = vmatprep.mubr.f32.mxu0 %v515_v1  ;;  %385 = vmatprep.mubr.f32.mxu1 %v515_v1 }
  0x36   :  { %432 = vmatmul.mubr.msk.f32.vlgmr.msra.gmra.mrb[2].mxu0 %vm104_vm2, %v103_v23  ;;  %435 = vmatmul.mubr.msk.f32.vlgmr.msra.gmra.mrb[2].mxu1 %vm104_vm2, %v103_v23 }
 0x105   :  { %v174_v25 = vpop.f32.mrb[0].mxu0  ;;  %v245_v26 = vpop.f32.mrb[0].mxu1 }
 0x106   :  { %392 = vst [vmem:[#allocation7] sm:$0xff] %v174_v25  ;;  %394 = vst [vmem:[#allocation7 + $0x10] sm:$0xff] %v245_v26  ;;  %v176_v27 = vpop.f32.mrb[1].mxu0  ;;  %v247_v28 = vpop.f32.mrb[1].mxu1 }
 0x107   :  { %393 = vst [vmem:[#allocation7 + $0x8] sm:$0xff] %v176_v27  ;;  %395 = vst [vmem:[#allocation7 + $0x18] sm:$0xff] %v247_v28 }
 0x109   :  { %v316_v29 = vpop.f32.mrb[2].mxu0  ;;  %v387_v30 = vpop.f32.mrb[2].mxu1 }
 0x10a   :  { %396 = vst [vmem:[#allocation7 + $0x20] sm:$0xff] %v316_v29  ;;  %398 = vst [vmem:[#allocation7 + $0x30] sm:$0xff] %v387_v30  ;;  %v318_v31 = vpop.f32.mrb[3].mxu0  ;;  %v389_v32 = vpop.f32.mrb[3].mxu1 }
 0x10b   :  { %397 = vst [vmem:[#allocation7 + $0x28] sm:$0xff] %v318_v31  ;;  %399 = vst [vmem:[#allocation7 + $0x38] sm:$0xff] %v389_v32 }
 0x10c   :  { %496 = shalt.err (!%p493_p6)
}
 0x10d   :  { %s497_s8 = scalar_lea.hbm %s575_s2, 1024 }
 0x10e   :  { %p498_p7 = scmp.ne.s32.totalorder %s575_s2, %s497_s8  ;;  %p501_p8 = scmp.lt.u32.totalorder %s497_s8, %s575_s2 }
 0x110   :  { %p503_p9 = pnand %p501_p8, %p498_p7 }
 0x112   :  { %506 = shalt.err (!%p503_p9)
}
 0x113   :  { %409 = dma.vmem_to_hbm [thread:$0]  %s407_s4, 1024, %s575_s2, [#allocation4]  }
 0x114   :  { %511 = dma.done.wait [#allocation4], 1024  }
 0x115   :  { %512 = vsyncadd [#allocation4], 4294966272 }
 0x116   :  { %413 = vsyncpa [#allocation3], 1 }
 0x117   :  { %414 = vsyncpa [#allocation6], 1 }
 0x118   :  { %415 = vsyncpa [#allocation4], 1 }

</bundles_post_ra>
